<compile_context>
chip_gen: v7x
topology: tpu7x:2x2x1
jax: 0.10.0
libtpu: 0.0.40
codegen_flags: <defaults>
</compile_context>

<pallas_src>
import functools

import numpy as np
import jax
import jax.numpy as jnp
from jax import lax
from jax.experimental import pallas as pl
from jax.experimental.pallas import tpu as pltpu


# ----------------------------------------------------------------------------------
# XLU rotate helper: probe pltpu.roll once (per lane width) so a direction-convention
# surprise or a lowering failure degrades gracefully to jnp.roll instead of breaking.
# ----------------------------------------------------------------------------------
_ROLL_MODE_CACHE = {}


def _probe_roll_next_mode(t):
    if t in _ROLL_MODE_CACHE:
        return _ROLL_MODE_CACHE[t]
    mode = "jnp"
    if t > 1:
        try:
            def _k(x_ref, o_ref):
                o_ref[...] = pltpu.roll(x_ref[...], t - 1, 1)

            x = np.arange(t, dtype=np.float32).reshape(1, t)
            y = pl.pallas_call(
                _k, out_shape=jax.ShapeDtypeStruct((1, t), jnp.float32))(jnp.asarray(x))
            y = np.asarray(jax.block_until_ready(y))
            if np.array_equal(y, np.roll(x, -1, axis=1)):
                mode = "shift_t_minus_1"      # pltpu.roll matches jnp.roll convention
            elif np.array_equal(y, np.roll(x, 1, axis=1)):
                mode = "shift_1"              # opposite convention
        except Exception:
            mode = "jnp"
    _ROLL_MODE_CACHE[t] = mode
    return mode


def _roll_next(a, mode):
    """Return `a` shifted so column t holds a[..., t+1] (wrap at the end)."""
    t = a.shape[-1]
    if mode == "shift_t_minus_1":
        return pltpu.roll(a, t - 1, a.ndim - 1)
    if mode == "shift_1":
        return pltpu.roll(a, 1, a.ndim - 1)
    return jnp.roll(a, -1, axis=-1)


# ----------------------------------------------------------------------------------
# Kernel: one batch row per grid step (batch axis is "parallel" -> megacore sharding).
# ----------------------------------------------------------------------------------
def _asl_kernel(preds_ref, sim_ref, aux_ref, out_ref, *,
                ignore_index, threshold, sigma, roll_mode):
    f32 = jnp.float32

    x = preds_ref[0].astype(f32)            # (C, T)  valid-compacted logits
    sim = sim_ref[0].astype(f32)            # (Cs, T) valid-compacted similarity feats
    aux = aux_ref[0]                        # (3, T)  [labels, masks, cw[label]*valid]
    labels_f = aux[0:1, :]                  # (1, T)
    masks = aux[1:2, :]                     # (1, T)
    wsel = aux[2:3, :]                      # (1, T)  0 at invalid columns

    C, T = x.shape
    labels = labels_f.astype(jnp.int32)
    valid = labels != ignore_index          # compaction puts the valid columns first
    nv_i = jnp.sum(valid.astype(jnp.int32))                           # num valid steps
    nv_f = nv_i.astype(f32)

    # ------------- CrossEntropy (class-axis softmax, weight, ignore_index) ---------
    mx_c = jnp.max(x, axis=0, keepdims=True)                          # (1, T)
    lse_c = jnp.log(jnp.sum(jnp.exp(x - mx_c), axis=0, keepdims=True)) + mx_c
    cls_ids = lax.broadcasted_iota(jnp.int32, (C, 1), 0)              # (C, 1)
    onehot = (labels == cls_ids).astype(f32)                          # (C, T)
    x_sel = jnp.sum(onehot * x, axis=0, keepdims=True)                # (1, T) x[label, t]
    ce_sum = jnp.sum(-wsel * (x_sel - lse_c))                         # scalar

    # ------------- GaussianSimilarityTMSE (time-axis log-softmax windows) ----------
    t_idx = lax.broadcasted_iota(jnp.int32, (1, T), 1)                # (1, T)
    neg_big = f32(-1e30)
    xm = jnp.where(valid, x, neg_big)                                 # (C, T)
    m = jnp.max(xm, axis=-1, keepdims=True)                           # (C, 1)
    ex = jnp.exp(xm - m)                                              # (C, T), 0 at invalid
    # window A = valid cols [1, nv)   (log_softmax of pred[:, 1:]  along time)
    # window B = valid cols [0, nv-1) (log_softmax of pred[:, :-1] along time)
    in_a = ((t_idx >= 1) & (t_idx < nv_i)).astype(f32)                # (1, T)
    in_b = (t_idx < nv_i - 1).astype(f32)                             # (1, T) == pair mask
    tiny = f32(1e-30)
    S_a = jnp.sum(ex * in_a, axis=-1, keepdims=True)                  # (C, 1)
    S_b = jnp.sum(ex * in_b, axis=-1, keepdims=True)                  # (C, 1)
    delta = jnp.log(jnp.maximum(S_b, tiny)) - jnp.log(jnp.maximum(S_a, tiny))  # lse_b - lse_a

    # adjacent (compacted) pair differences: column k pairs valid steps (k, k+1)
    xn = _roll_next(x, roll_mode)                                     # x[:, t+1]
    d = (xn - x) + delta                                              # ls_a - ls_b
    thr2 = f32(threshold * threshold)
    sq = jnp.minimum(d * d, thr2)                                     # clamp to [0, thr^2]

    simn = _roll_next(sim, roll_mode)
    dsim = simn - sim                                                 # (Cs, T)
    nrm = jnp.sqrt(jnp.sum(dsim * dsim, axis=0, keepdims=True))       # (1, T)
    similarity = jnp.exp(nrm * f32(-1.0 / (2.0 * sigma * sigma)))     # (1, T)
    maskn = _roll_next(masks, roll_mode)                              # mask at step k+1
    w = similarity * maskn * in_b                                     # (1, T)

    denom = jnp.maximum(nv_f - 1.0, 1.0)                              # guard nv<=1
    loss_c = jnp.sum(sq * w, axis=-1, keepdims=True) / denom          # (C, 1) exact divide
    gst_val = jnp.sum(loss_c) * f32(1.0 / C)                          # mean over classes

    lane = lax.broadcasted_iota(jnp.int32, (1, 1, 2), 2)
    out_ref[...] = jnp.where(lane == 0, ce_sum, gst_val)              # [CE_sum, GST_mean]


# ----------------------------------------------------------------------------------
# Wrapper
# ----------------------------------------------------------------------------------
def action_segmentation_loss(preds, labels, sim_index, masks, precise_sliding_num,
                             class_weight, *, sample_rate=1, threshold=4.0,
                             ignore_index=255, sigma=1.0, ce_weight=1.0,
                             gstmse_weight=0.15, eps=1e-10):
    """Forward pass of ActionSegmentationLoss (CE + GaussianSimilarityTMSE).

    NOTE: mirroring the PyTorch forward, `ce_weight` is accepted but NOT applied to
    the CrossEntropy term (the torch code adds that branch unweighted); only
    `gstmse_weight` scales the GST term.
    """
    N, C, T = preds.shape
    Cs = sim_index.shape[1]
    assert sim_index.shape[-1] * sample_rate == T, "sample_rate must upsample sim_index to T"

    labels = labels.astype(jnp.int32)
    valid = labels != ignore_index                                    # (N, T)
    t_idx = jnp.arange(T, dtype=jnp.int32)[None, :]

    # Compact valid (label != ignore_index) steps to the front of each row: a
    # static-shape replacement for the dynamic torch.where(...) column selection.
    order = jnp.argsort(jnp.where(valid, t_idx, t_idx + T), axis=-1)  # (N, T)
    preds_g = jnp.take_along_axis(preds, order[:, None, :], axis=2)   # keeps dtype (bf16 ok)
    # Nearest-neighbour upsample (F.interpolate, scale_factor=[1, sample_rate]) fused
    # into the same gather: upsampled column order[k] == source column order[k]//rate.
    sim_g = jnp.take_along_axis(sim_index, (order // sample_rate)[:, None, :], axis=2)

    labels_g = jnp.take_along_axis(labels, order, axis=1)
    masks_g = jnp.take_along_axis(masks.astype(jnp.float32), order, axis=1)
    valid_g = jnp.take_along_axis(valid, order, axis=1)
    cw = class_weight.astype(jnp.float32)
    wsel_g = jnp.where(valid_g, cw[jnp.clip(labels_g, 0, C - 1)], 0.0)
    aux = jnp.stack([labels_g.astype(jnp.float32), masks_g, wsel_g], axis=1)  # (N, 3, T)

    roll_mode = _probe_roll_next_mode(T)
    kernel = functools.partial(_asl_kernel, ignore_index=int(ignore_index),
                               threshold=float(threshold), sigma=float(sigma),
                               roll_mode=roll_mode)

    # VMEM budget: double-buffered input blocks + live f32 temporaries, capped by the
    # physical VMEM of the current chip (v7x: 64 MiB, v5e/v6e: 128 MiB) with headroom.
    in_bytes = T * (C * preds.dtype.itemsize + Cs * sim_index.dtype.itemsize + 3 * 4)
    tmp_bytes = 4 * T * (4 * C + 2 * Cs + 10)
    need = 2 * in_bytes + tmp_bytes + (2 << 20)
    phys = 64 * 1024 * 1024
    try:
        info = pltpu.get_tpu_info()
        for name in ("vmem_capacity_bytes", "vmem_bytes", "vmem_size_bytes"):
            v = getattr(info, name, None)
            if v:
                phys = int(v)
                break
    except Exception:
        pass
    vmem_limit = int(min(max(need, 32 * 1024 * 1024), int(phys * 0.85)))

    partial_sums = pl.pallas_call(
        kernel,
        grid_spec=pltpu.PrefetchScalarGridSpec(
            num_scalar_prefetch=0,
            grid=(N,),
            in_specs=[
                pl.BlockSpec((1, C, T), lambda b: (b, 0, 0)),   # compacted logits
                pl.BlockSpec((1, Cs, T), lambda b: (b, 0, 0)),  # compacted sim feats
                pl.BlockSpec((1, 3, T), lambda b: (b, 0, 0)),   # labels/masks/cw[label]
            ],
            out_specs=pl.BlockSpec((1, 1, 2), lambda b: (b, 0, 0)),
        ),
        out_shape=jax.ShapeDtypeStruct((N, 1, 2), jnp.float32),
        compiler_params=pltpu.CompilerParams(
            dimension_semantics=("parallel",),   # shard batch across TensorCores
            vmem_limit_bytes=vmem_limit,
        ),
    )(preds_g, sim_g, aux)

    # Tiny O(N) finalisation in XLA keeps the batch grid axis fully parallel.
    ce_b = partial_sums[:, 0, 0]
    gst_b = partial_sums[:, 0, 1]
    pnum = precise_sliding_num.astype(jnp.float32).reshape(N)
    inv_pnum = 1.0 / (pnum + eps)
    n_not_m100 = jnp.sum((labels != -100).astype(jnp.float32))
    ce_loss = jnp.sum(ce_b * inv_pnum) / (n_not_m100 + eps)
    gst_loss = jnp.sum(gst_b * inv_pnum) / N
    return ce_loss + gstmse_weight * gst_loss


# ----------------------------------------------------------------------------------
# Pure-numpy transcription of the PyTorch forward (verification only).
# ----------------------------------------------------------------------------------
def _reference_loss(preds, labels, sim_index, masks, pnum, cw, *,
                    threshold=4.0, ignore_index=255, sigma=1.0,
                    gstmse_weight=0.15, sample_rate=1, eps=1e-10):
    preds = preds.astype(np.float64)
    sim_index = sim_index.astype(np.float64)
    masks = masks.astype(np.float64)
    pnum = pnum.astype(np.float64)
    cw = cw.astype(np.float64)
    N, C, T = preds.shape

    def lsm(x, axis):
        m = x.max(axis=axis, keepdims=True)
        return x - (np.log(np.exp(x - m).sum(axis=axis, keepdims=True)) + m)

    logp = lsm(preds, 1)
    ce = np.zeros((N, T))
    for b in range(N):
        for t in range(T):
            y = int(labels[b, t])
            if y != ignore_index:
                ce[b, t] = -cw[y] * logp[b, y, t]
    ce_loss = (ce.sum(-1) / (pnum + eps)).sum() / ((labels != -100).sum() + eps)

    sim_up = np.repeat(sim_index, sample_rate, axis=-1)
    total = 0.0
    for b in range(N):
        vidx = np.where(labels[b] != ignore_index)[0]
        p = preds[b][:, vidx]
        s = sim_up[b][:, vidx]
        m = masks[b, vidx]
        diff = s[:, 1:] - s[:, :-1]
        similarity = np.exp(-np.linalg.norm(diff, axis=0) / (2 * sigma ** 2))
        sq = np.clip((lsm(p[:, 1:], 1) - lsm(p[:, :-1], 1)) ** 2, 0, threshold ** 2)
        sq = sq * m[1:][None, :]
        l = (similarity[None, :] * sq).mean(axis=-1)
        total += l.mean() / (pnum[b] + eps)
    gst = total / N
    return ce_loss + gstmse_weight * gst


if __name__ == "__main__":
    key = jax.random.PRNGKey(0)
    N, C, Csim, T, SR = 2, 8, 4, 128, 2
    k1, k2, k3, k4 = jax.random.split(key, 4)

    preds = jax.random.normal(k1, (N, C, T), jnp.float32)
    labels = jax.random.randint(k2, (N, T), 0, C).astype(jnp.int32)
    # interleave some ignore_index (255) frames to exercise the compaction path
    labels = labels.at[0, 3].set(255).at[0, 77].set(255).at[1, 10].set(255).at[1, 120].set(255)
    sim_index = jax.random.normal(k3, (N, Csim, T // SR), jnp.float32)
    masks = (jax.random.uniform(k4, (N, T)) > 0.2).astype(jnp.float32)
    precise_sliding_num = jnp.array([1.0, 2.0], jnp.float32)
    class_weight = 0.5 + 0.1 * jnp.arange(C, dtype=jnp.float32)

    fn = jax.jit(functools.partial(action_segmentation_loss, sample_rate=SR))
    loss = jax.block_until_ready(fn(preds, labels, sim_index, masks,
                                    precise_sliding_num, class_weight))

    ref = _reference_loss(np.asarray(preds), np.asarray(labels), np.asarray(sim_index),
                          np.asarray(masks), np.asarray(precise_sliding_num),
                          np.asarray(class_weight), sample_rate=SR)
    np.testing.assert_allclose(float(loss), float(ref), rtol=2e-3, atol=1e-6)
    print("KERNEL_OK")
</pallas_src>

<mosaic_0001>
module attributes {stable_mosaic.version = 11 : i64} {
  func.func @_asl_kernel(%arg0: i32, %arg1: memref<1x8x128xf32, #tpu.memory_space<vmem>>, %arg2: memref<1x4x128xf32, #tpu.memory_space<vmem>>, %arg3: memref<1x3x128xf32, #tpu.memory_space<vmem>>, %arg4: memref<1x1x2xf32, #tpu.memory_space<vmem>>) attributes {dimension_semantics = [#tpu.dimension_semantics<parallel>], iteration_bounds = array<i64: 2>, scalar_prefetch = 0 : i64, scratch_operands = 0 : i64, tpu.core_type = #tpu.core_type<tc>, window_params = [{transform_indices = @transform_0, window_bounds = array<i64: 1, 8, 128>}, {transform_indices = @transform_1, window_bounds = array<i64: 1, 4, 128>}, {transform_indices = @transform_2, window_bounds = array<i64: 1, 3, 128>}, {transform_indices = @transform_3, window_bounds = array<i64: 1, 1, 2>}]} {
    %c0 = arith.constant 0 : index
    %c0_0 = arith.constant 0 : index
    %c0_1 = arith.constant 0 : index
    %0 = vector.load %arg1[%c0, %c0_0, %c0_1] : memref<1x8x128xf32, #tpu.memory_space<vmem>>, vector<1x8x128xf32>
    %1 = vector.shape_cast %0 : vector<1x8x128xf32> to vector<8x128xf32>
    %c0_2 = arith.constant 0 : index
    %c0_3 = arith.constant 0 : index
    %c0_4 = arith.constant 0 : index
    %2 = vector.load %arg2[%c0_2, %c0_3, %c0_4] : memref<1x4x128xf32, #tpu.memory_space<vmem>>, vector<1x4x128xf32>
    %3 = vector.shape_cast %2 : vector<1x4x128xf32> to vector<4x128xf32>
    %c0_5 = arith.constant 0 : index
    %c0_6 = arith.constant 0 : index
    %c0_7 = arith.constant 0 : index
    %4 = vector.load %arg3[%c0_5, %c0_6, %c0_7] : memref<1x3x128xf32, #tpu.memory_space<vmem>>, vector<1x3x128xf32>
    %5 = vector.shape_cast %4 : vector<1x3x128xf32> to vector<3x128xf32>
    %6 = vector.extract_strided_slice %5 {offsets = [0, 0], sizes = [1, 128], strides = [1, 1]} : vector<3x128xf32> to vector<1x128xf32>
    %7 = vector.extract_strided_slice %5 {offsets = [1, 0], sizes = [1, 128], strides = [1, 1]} : vector<3x128xf32> to vector<1x128xf32>
    %8 = vector.extract_strided_slice %5 {offsets = [2, 0], sizes = [1, 128], strides = [1, 1]} : vector<3x128xf32> to vector<1x128xf32>
    %9 = arith.fptosi %6 : vector<1x128xf32> to vector<1x128xi32>
    %c255_i32 = arith.constant 255 : i32
    %10 = vector.broadcast %c255_i32 : i32 to vector<1x128xi32>
    %11 = arith.cmpi ne, %9, %10 : vector<1x128xi32>
    %12 = arith.extui %11 : vector<1x128xi1> to vector<1x128xi32>
    %13 = vector.shape_cast %12 : vector<1x128xi32> to vector<1x1x128xi32>
    %cst = arith.constant dense<0> : vector<1xi32>
    %14 = vector.multi_reduction <add>, %13, %cst [1, 2] : vector<1x1x128xi32> to vector<1xi32>
    %15 = vector.shape_cast %14 : vector<1xi32> to vector<1x1x1xi32>
    %16 = vector.extract %15[0, 0, 0] : i32 from vector<1x1x1xi32>
    %17 = arith.sitofp %16 : i32 to f32
    %cst_8 = arith.constant dense<0xFF800000> : vector<128xf32>
    %18 = vector.multi_reduction <maximumf>, %1, %cst_8 [0] : vector<8x128xf32> to vector<128xf32>
    %19 = vector.shape_cast %18 : vector<128xf32> to vector<1x128xf32>
    %20 = vector.broadcast %19 : vector<1x128xf32> to vector<8x128xf32>
    %21 = arith.subf %1, %20 : vector<8x128xf32>
    %22 = math.exp %21 : vector<8x128xf32>
    %cst_9 = arith.constant dense<0.000000e+00> : vector<128xf32>
    %23 = vector.multi_reduction <add>, %22, %cst_9 [0] : vector<8x128xf32> to vector<128xf32>
    %24 = vector.shape_cast %23 : vector<128xf32> to vector<1x128xf32>
    %25 = math.log %24 : vector<1x128xf32>
    %26 = arith.addf %25, %19 : vector<1x128xf32>
    %27 = tpu.iota {dimensions = array<i32: 0>} : vector<8x1xi32>
    %28 = vector.broadcast %9 : vector<1x128xi32> to vector<8x128xi32>
    %29 = vector.broadcast %27 : vector<8x1xi32> to vector<8x128xi32>
    %30 = arith.cmpi eq, %28, %29 : vector<8x128xi32>
    %31 = arith.extui %30 : vector<8x128xi1> to vector<8x128xi32>
    %32 = arith.sitofp %31 : vector<8x128xi32> to vector<8x128xf32>
    %33 = arith.mulf %32, %1 : vector<8x128xf32>
    %cst_10 = arith.constant dense<0.000000e+00> : vector<128xf32>
    %34 = vector.multi_reduction <add>, %33, %cst_10 [0] : vector<8x128xf32> to vector<128xf32>
    %35 = vector.shape_cast %34 : vector<128xf32> to vector<1x128xf32>
    %cst_11 = arith.constant 0.000000e+00 : f32
    %36 = vector.broadcast %cst_11 : f32 to vector<1x128xf32>
    %37 = arith.subf %36, %8 : vector<1x128xf32>
    %38 = arith.subf %35, %26 : vector<1x128xf32>
    %39 = arith.mulf %37, %38 : vector<1x128xf32>
    %40 = vector.shape_cast %39 : vector<1x128xf32> to vector<1x1x128xf32>
    %cst_12 = arith.constant dense<0.000000e+00> : vector<1xf32>
    %41 = vector.multi_reduction <add>, %40, %cst_12 [1, 2] : vector<1x1x128xf32> to vector<1xf32>
    %42 = vector.shape_cast %41 : vector<1xf32> to vector<1x1x1xf32>
    %43 = vector.extract %42[0, 0, 0] : f32 from vector<1x1x1xf32>
    %44 = tpu.iota {dimensions = array<i32: 1>} : vector<1x128xi32>
    %cst_13 = arith.constant -1.000000e+30 : f32
    %45 = vector.shape_cast %11 : vector<1x128xi1> to vector<1x128xi1>
    %46 = vector.broadcast %45 : vector<1x128xi1> to vector<8x128xi1>
    %47 = vector.broadcast %cst_13 : f32 to vector<8x128xf32>
    %48 = arith.select %46, %1, %47 : vector<8x128xi1>, vector<8x128xf32>
    %cst_14 = arith.constant dense<0xFF800000> : vector<8xf32>
    %49 = vector.multi_reduction <maximumf>, %48, %cst_14 [1] : vector<8x128xf32> to vector<8xf32>
    %50 = vector.shape_cast %49 : vector<8xf32> to vector<8x1xf32>
    %51 = vector.broadcast %50 : vector<8x1xf32> to vector<8x128xf32>
    %52 = arith.subf %48, %51 : vector<8x128xf32>
    %53 = math.exp %52 : vector<8x128xf32>
    %c1_i32 = arith.constant 1 : i32
    %54 = vector.broadcast %c1_i32 : i32 to vector<1x128xi32>
    %55 = arith.cmpi sge, %44, %54 : vector<1x128xi32>
    %56 = vector.broadcast %16 : i32 to vector<1x128xi32>
    %57 = arith.cmpi slt, %44, %56 : vector<1x128xi32>
    %58 = arith.andi %55, %57 : vector<1x128xi1>
    %59 = arith.extui %58 : vector<1x128xi1> to vector<1x128xi32>
    %60 = arith.sitofp %59 : vector<1x128xi32> to vector<1x128xf32>
    %c1_i32_15 = arith.constant 1 : i32
    %61 = arith.subi %16, %c1_i32_15 : i32
    %62 = vector.broadcast %61 : i32 to vector<1x128xi32>
    %63 = arith.cmpi slt, %44, %62 : vector<1x128xi32>
    %64 = arith.extui %63 : vector<1x128xi1> to vector<1x128xi32>
    %65 = arith.sitofp %64 : vector<1x128xi32> to vector<1x128xf32>
    %66 = vector.broadcast %60 : vector<1x128xf32> to vector<8x128xf32>
    %67 = arith.mulf %53, %66 : vector<8x128xf32>
    %cst_16 = arith.constant dense<0.000000e+00> : vector<8xf32>
    %68 = vector.multi_reduction <add>, %67, %cst_16 [1] : vector<8x128xf32> to vector<8xf32>
    %69 = vector.shape_cast %68 : vector<8xf32> to vector<8x1xf32>
    %70 = vector.broadcast %65 : vector<1x128xf32> to vector<8x128xf32>
    %71 = arith.mulf %53, %70 : vector<8x128xf32>
    %cst_17 = arith.constant dense<0.000000e+00> : vector<8xf32>
    %72 = vector.multi_reduction <add>, %71, %cst_17 [1] : vector<8x128xf32> to vector<8xf32>
    %73 = vector.shape_cast %72 : vector<8xf32> to vector<8x1xf32>
    %cst_18 = arith.constant 1.000000e-30 : f32
    %74 = vector.broadcast %cst_18 : f32 to vector<8x1xf32>
    %75 = arith.maximumf %73, %74 : vector<8x1xf32>
    %76 = math.log %75 : vector<8x1xf32>
    %cst_19 = arith.constant 1.000000e-30 : f32
    %77 = vector.broadcast %cst_19 : f32 to vector<8x1xf32>
    %78 = arith.maximumf %69, %77 : vector<8x1xf32>
    %79 = math.log %78 : vector<8x1xf32>
    %80 = arith.subf %76, %79 : vector<8x1xf32>
    %81 = vector.extract_strided_slice %1 {offsets = [0, 1], sizes = [8, 127], strides = [1, 1]} : vector<8x128xf32> to vector<8x127xf32>
    %82 = vector.extract_strided_slice %1 {offsets = [0, 0], sizes = [8, 1], strides = [1, 1]} : vector<8x128xf32> to vector<8x1xf32>
    %83 = tpu.concatenate %81, %82 in 1 : vector<8x127xf32>, vector<8x1xf32> -> vector<8x128xf32>
    %84 = arith.subf %83, %1 : vector<8x128xf32>
    %85 = vector.broadcast %80 : vector<8x1xf32> to vector<8x128xf32>
    %86 = arith.addf %84, %85 : vector<8x128xf32>
    %87 = arith.mulf %86, %86 : vector<8x128xf32>
    %cst_20 = arith.constant 1.600000e+01 : f32
    %88 = vector.broadcast %cst_20 : f32 to vector<8x128xf32>
    %89 = arith.minimumf %87, %88 : vector<8x128xf32>
    %90 = vector.extract_strided_slice %3 {offsets = [0, 1], sizes = [4, 127], strides = [1, 1]} : vector<4x128xf32> to vector<4x127xf32>
    %91 = vector.extract_strided_slice %3 {offsets = [0, 0], sizes = [4, 1], strides = [1, 1]} : vector<4x128xf32> to vector<4x1xf32>
    %92 = tpu.concatenate %90, %91 in 1 : vector<4x127xf32>, vector<4x1xf32> -> vector<4x128xf32>
    %93 = arith.subf %92, %3 : vector<4x128xf32>
    %94 = arith.mulf %93, %93 : vector<4x128xf32>
    %cst_21 = arith.constant dense<0.000000e+00> : vector<128xf32>
    %95 = vector.multi_reduction <add>, %94, %cst_21 [0] : vector<4x128xf32> to vector<128xf32>
    %96 = vector.shape_cast %95 : vector<128xf32> to vector<1x128xf32>
    %97 = math.sqrt %96 : vector<1x128xf32>
    %cst_22 = arith.constant -5.000000e-01 : f32
    %98 = vector.broadcast %cst_22 : f32 to vector<1x128xf32>
    %99 = arith.mulf %97, %98 : vector<1x128xf32>
    %100 = math.exp %99 : vector<1x128xf32>
    %101 = vector.extract_strided_slice %7 {offsets = [0, 1], sizes = [1, 127], strides = [1, 1]} : vector<1x128xf32> to vector<1x127xf32>
    %102 = vector.extract_strided_slice %7 {offsets = [0, 0], sizes = [1, 1], strides = [1, 1]} : vector<1x128xf32> to vector<1x1xf32>
    %103 = tpu.concatenate %101, %102 in 1 : vector<1x127xf32>, vector<1x1xf32> -> vector<1x128xf32>
    %104 = arith.mulf %100, %103 : vector<1x128xf32>
    %105 = arith.mulf %104, %65 : vector<1x128xf32>
    %cst_23 = arith.constant 1.000000e+00 : f32
    %106 = arith.subf %17, %cst_23 : f32
    %cst_24 = arith.constant 1.000000e+00 : f32
    %107 = arith.maximumf %106, %cst_24 : f32
    %108 = vector.broadcast %105 : vector<1x128xf32> to vector<8x128xf32>
    %109 = arith.mulf %89, %108 : vector<8x128xf32>
    %cst_25 = arith.constant dense<0.000000e+00> : vector<8xf32>
    %110 = vector.multi_reduction <add>, %109, %cst_25 [1] : vector<8x128xf32> to vector<8xf32>
    %111 = vector.shape_cast %110 : vector<8xf32> to vector<8x1xf32>
    %112 = vector.broadcast %107 : f32 to vector<8x1xf32>
    %113 = arith.divf %111, %112 : vector<8x1xf32>
    %114 = vector.shape_cast %113 : vector<8x1xf32> to vector<1x8x1xf32>
    %cst_26 = arith.constant dense<0.000000e+00> : vector<1xf32>
    %115 = vector.multi_reduction <add>, %114, %cst_26 [1, 2] : vector<1x8x1xf32> to vector<1xf32>
    %116 = vector.shape_cast %115 : vector<1xf32> to vector<1x1x1xf32>
    %117 = vector.extract %116[0, 0, 0] : f32 from vector<1x1x1xf32>
    %cst_27 = arith.constant 1.250000e-01 : f32
    %118 = arith.mulf %117, %cst_27 : f32
    %119 = tpu.iota {dimensions = array<i32: 2>} : vector<1x1x2xi32>
    %c0_i32 = arith.constant 0 : i32
    %120 = vector.broadcast %c0_i32 : i32 to vector<1x1x2xi32>
    %121 = arith.cmpi eq, %119, %120 : vector<1x1x2xi32>
    %122 = vector.broadcast %43 : f32 to vector<1x1x2xf32>
    %123 = vector.broadcast %118 : f32 to vector<1x1x2xf32>
    %124 = arith.select %121, %122, %123 : vector<1x1x2xi1>, vector<1x1x2xf32>
    %c0_28 = arith.constant 0 : index
    %c0_29 = arith.constant 0 : index
    %c0_30 = arith.constant 0 : index
    %125 = vector.load %arg4[%c0_28, %c0_29, %c0_30] : memref<1x1x2xf32, #tpu.memory_space<vmem>>, vector<1x1x2xf32>
    tpu.vector_store %arg4[%c0_28, %c0_29, %c0_30], %124 {strides = array<i32>} : memref<1x1x2xf32, #tpu.memory_space<vmem>>, vector<1x1x2xf32>,
    return
  }
  func.func @transform_0(%arg0: i32) -> (i32, i32, i32) {
    %c0_i32 = arith.constant 0 : i32
    %c0_i32_0 = arith.constant 0 : i32
    %c0_i32_1 = arith.constant 0 : i32
    return %arg0, %c0_i32, %c0_i32_0 : i32, i32, i32
  }
  func.func @transform_1(%arg0: i32) -> (i32, i32, i32) {
    %c0_i32 = arith.constant 0 : i32
    %c0_i32_0 = arith.constant 0 : i32
    %c0_i32_1 = arith.constant 0 : i32
    return %arg0, %c0_i32, %c0_i32_0 : i32, i32, i32
  }
  func.func @transform_2(%arg0: i32) -> (i32, i32, i32) {
    %c0_i32 = arith.constant 0 : i32
    %c0_i32_0 = arith.constant 0 : i32
    %c0_i32_1 = arith.constant 0 : i32
    return %arg0, %c0_i32, %c0_i32_0 : i32, i32, i32
  }
  func.func @transform_3(%arg0: i32) -> (i32, i32, i32) {
    %c0_i32 = arith.constant 0 : i32
    %c0_i32_0 = arith.constant 0 : i32
    %c0_i32_1 = arith.constant 0 : i32
    return %arg0, %c0_i32, %c0_i32_0 : i32, i32, i32
  }
}

</mosaic_0001>

<bundles_post_ra>
// kernel: action_segmentation_loss.1
= control target key start
LH: loop header
LB: loop body
LE: loop exit
PB: predicated region body
PF: predicated region fallthrough
CT: control target
= control target key end

     0   :  { %s535_s12 = smov 0   ;;  %s605_s0 = inlined_call_operand.vmem [shape: f32[2,8,128], index: 0, kind: input, shape index: {}]   ;;  %s606_s1 = inlined_call_operand.vmem [shape: f32[2,4,128], index: 1, kind: input, shape index: {}]   ;;  %s607_s2 = inlined_call_operand.vmem [shape: f32[2,3,128], index: 2, kind: input, shape index: {}]   ;;  %s608_s3 = inlined_call_operand.vmem [shape: f32[2,1,2], index: 3, kind: output, shape index: {}]  }
   0x1 LB: > { %s452_s13 = sadd.s32 4294967295, %s509_s12   ;;  %p456_p0 = scmp.ge.s32.totalorder %s509_s12, 1  ;;  %s509_s12 = sphi %s535_s12, %s13_s12  }
   0x2   : > { %p154_p1 = scmp.lt.s32.totalorder %s509_s12, 3 }
   0x4   : > { %p155_p2 = pnand %p456_p0, %p154_p1 }
   0x5   : > { %p183_p3 = scmp.lt.s32.totalorder (!%p155_p2), %s452_s13, 1  ;;  %v244_v0 = vlaneseq (!%p155_p2)  ;;  %vm204_vm0 = vcmask (!%p155_p2), 1040384   ;;  %v511_v7 = vmov (!%p155_p2), 0   ;;  %s512_s25 = smov (!%p155_p2), 127   ;;  %v513_v37 = vmov (!%p155_p2), 0.0  }
   0x6   : > { %158 = sbr.rel (%p155_p2) target bundleno = 771 (0x303), region = 32  ;;  %vm327_vm8 = vcmask (!%p155_p2), 1043456   ;;  %s514_s30 = smov (!%p155_p2), 1.0   ;;  %vm363_vm11 = vcmask (!%p155_p2), 7168   ;;  %vm379_vm13 = vcmask (!%p155_p2), 8192  }
   0x7   : > { %v549_v1 = vshrl.u32 (!%p155_p2), %v244_v0, 7  ;;  %v571_v33 = vand.u32 (!%p155_p2), 127, %v244_v0 }
   0x9   : > { %v248_v5 = vsub.s32 (!%p155_p2), 0, %v549_v1  ;;  %vm289_vm3 = vcmp.ge.s32.totalorder (!%p155_p2), %v571_v33, 1  ;;  %vm375_vm12 = vcmp.eq.s32.totalorder (!%p155_p2), %v571_v33, 0 }
   0xd   : > { %s610_s13 = smov (!%p183_p3, %s452_s13), 1 }
   0xe   : > { %s458_s14 = sshll.u32 %s610_s13, 2  ;;  %s457_s18 = sshll.u32 %s610_s13, 3 }
   0xf   : > { %s194_s17 = scalar_lea.vmem %s607_s2, %s458_s14  ;;  %s186_s21 = scalar_lea.vmem %s605_s0, %s457_s18 }
  0x10   : > { %v551_v2 = vld [vmem:[%s194_s17] sm:$0x7]  ;;  %s190_s24 = scalar_lea.vmem %s606_s1, %s458_s14  ;;  %s197_s10 = scalar_lea.vmem %s608_s3, %s610_s13 }
  0x11   : > { %v467_v3 = vtrunc.f32 %v551_v2  ;;  %v562_v10 = vld [vmem:[%s186_s21] sm:$0xff] }
  0x12   : > { %v199_v17 = vld [vmem:[%s190_s24] sm:$0xf]  ;;  %v226_v42 = vrot.slane %v562_v10, 4 }
  0x13   : > { %v468_v4 = vcvt.f32.s32 %v467_v3 }
  0x14   : > { %v227_v43 = vmax.f32 %v562_v10, %v226_v42 }
  0x15   : > { %vm202_vm1 = vcmp.ne.s32.totalorder %v468_v4, 255  ;;  %v559_v6 = vrot.slane %v468_v4, %v248_v5 }
  0x16   : > { %v203_v8 = vsel %vm202_vm1, 1, %v511_v7  ;;  %v228_v44 = vrot.slane %v227_v43, 2 }
  0x17   : > { %v205_v9 = vsel %vm204_vm0, %v203_v8, 0  ;;  %v281_v11 = vrot.slane %v203_v8, %v248_v5  ;;  %vm250_vm7 = vcmp.eq.s32.totalorder %v559_v6, %v549_v1 }
  0x18   : > { %v207_v12 = vshrl.u32 %v205_v9, 16  ;;  %v206_v13 = vand.u32 65535, %v205_v9  ;;  %v229_v45 = vmax.f32 %v227_v43, %v228_v44  ;;  %v460_v50 = vsel %vm250_vm7, 1.0, %v513_v37 }
  0x19   : > { %vm282_vm2 = vcmp.eq.s32.totalorder %v281_v11, 1  ;;  %v253_v52 = vmul.f32 %v460_v50, %v562_v10 }
  0x1a   : > { %v209_v14 = vcvt.s32.f32 %v207_v12  ;;  %v283_v15 = vsel %vm282_vm2, %v562_v10, -1e+30  ;;  %v208_v16 = vcvt.s32.f32 %v206_v13  ;;  %v230_v46 = vrot.slane %v229_v45, 1 }
  0x1b   : > { %284 = vmax.xlane.f32.xlu1 %v283_v15  ;;  %v254_v55 = vrot.slane %v253_v52, 4  ;;  %v260_v13 = vsub.f32 0.0, %v551_v2 }
  0x1c   : > { %212 = vadd.xlane.f32.xlu0 %v209_v14  ;;  %v231_v47 = vmax.f32 %v229_v45, %v230_v46  ;;  %v355_v46 = vsub.s32 1, %v549_v1 }
  0x1d   : > { %v255_v59 = vadd.f32 %v254_v55, %v253_v52 }
  0x1e   : > { %v232_v48 = vsub.f32 %v562_v10, %v231_v47 }
  0x1f   : > { %v256_v63 = vrot.slane %v255_v59, 2 }
  0x20   : > { %210 = vadd.xlane.f32.xlu0 %v208_v16  ;;  %v233_v49 = vmul.f32 1.442695, %v232_v48 }
  0x21   : > { %v257_v3 = vadd.f32 %v256_v63, %v255_v59 }
  0x23   : > { %v258_v5 = vrot.slane %v257_v3, 1 }
  0x25   : > { %v259_v9 = vadd.f32 %v258_v5, %v257_v3 }
  0x2c   : > { %322 = vrot.lane.b32.xlu1 %v199_v17, %s512_s25 }
  0x30   : > { %346 = vrot.lane.b32.xlu1 %v551_v2, %s512_s25 }
  0xa8   : > { %v285_v30 = vpop.xlane.xlu1 %284 }
  0xa9   : > { %v213_v18 = vpop.xlane.xlu0 %212  ;;  %v286_v31 = vsub.f32 %v283_v15, %v285_v30 }
  0xaa   : > { %v215_v19 = vcvt.f32.s32 %v213_v18 }
  0xab   : > { %v287_v32 = vmul.f32 1.442695, %v286_v31 }
  0xac   : > { %v216_v21 = vshll.u32 %v215_v19, 16  ;;  %v323_v57 = vpop.permute.xlu1 %322 }
  0xad   : > { %v211_v20 = vpop.xlane.xlu0 %210  ;;  %487 = vpow2.f32 %v287_v32  ;;  %v325_v61 = vsub.f32 %v323_v57, %v199_v17 }
  0xae   : > { %v214_v22 = vcvt.f32.s32 %v211_v20  ;;  %489 = vpow2.f32 %v233_v49 }
  0xaf   : > { %v326_v0 = vmul.f32 %v325_v61, %v325_v61 }
  0xb0   : > { %v217_v23 = vadd.s32 %v216_v21, %v214_v22 }
  0xb1   : > { %v328_v4 = vsel %vm327_vm8, %v326_v0, 0.0 }
  0xb2   : > { %v218_v24 = vrot.slane %v217_v23, 4  ;;  %v329_v6 = vrot.slane %v328_v4, 4 }
  0xb4   : > { %v219_v25 = vadd.s32 %v218_v24, %v217_v23  ;;  %v330_v11 = vadd.f32 %v329_v6, %v328_v4 }
  0xb6   : > { %v220_v26 = vrot.slane %v219_v25, 2  ;;  %v331_v15 = vrot.slane %v330_v11, 2 }
  0xb7   : > { %v488_v35 = vpop.eup %487 }
  0xb8   : > { %v221_v27 = vadd.s32 %v220_v26, %v219_v25  ;;  %v490_v51 = vpop.eup %489  ;;  %v332_v18 = vadd.f32 %v331_v15, %v330_v11 }
  0xb9   : > { %v235_v53 = vrot.slane %v490_v51, 4 }
  0xba   : > { %v222_v28 = vrot.slane %v221_v27, 1  ;;  %v333_v20 = vrot.slane %v332_v18, 1 }
  0xbb   : > { %v236_v54 = vadd.f32 %v490_v51, %v235_v53 }
  0xbc   : > { %v223_v29 = vadd.s32 %v222_v28, %v221_v27  ;;  %v334_v21 = vadd.f32 %v333_v20, %v332_v18 }
  0xbd   : > { %v237_v56 = vrot.slane %v236_v54, 2 }
  0xbe   : > { %469 = vpush %v223_v29  ;;  %vm337_vm9 = vcmp.eq.f32.partialorder %v334_v21, inf  ;;  %v340_v24 = vand.u32 2147483648, %v334_v21  ;;  %vm339_vm10 = vcmp.eq.f32.partialorder %v334_v21, 0.0 }
  0xbf   : > { %v238_v58 = vadd.f32 %v237_v56, %v236_v54 }
  0xc1   : > { %v239_v60 = vrot.slane %v238_v58, 1 }
  0xc3   : > { %v240_v62 = vadd.f32 %v239_v60, %v238_v58 }
  0xc5   : > { %491 = vlog2.f32 %v240_v62 }
  0xc6   : > { %493 = vrsqrt.f32 %v334_v21 }
  0xcf   : > { %v492_v7 = vpop.eup %491 }
  0xd0   : > { %v242_v8 = vmul.f32 0.6931472, %v492_v7  ;;  %v494_v22 = vpop.eup %493 }
  0xd1   : > { %v336_v23 = vmul.f32 %v494_v22, %v334_v21 }
  0xd2   : > { %v243_v12 = vadd.f32 %v242_v8, %v231_v47 }
  0xd3   : > { %v338_v25 = vsel %vm337_vm9, %v334_v21, %v336_v23 }
  0xd4   : > { %v261_v14 = vsub.f32 %v259_v9, %v243_v12  ;;  %v341_v26 = vsel %vm339_vm10, %v340_v24, %v338_v25 }
  0xd5   : > { %v342_v27 = vmul.f32 -0.5, %v341_v26 }
  0xd6   : > { %v262_v16 = vmul.f32 %v261_v14, %v260_v13 }
  0xd7   : > { %v343_v2 = vmul.f32 1.442695, %v342_v27 }
  0xd8   : > { %v264_v17 = vrot.slane %v262_v16, 2 }
  0xd9   : > { %495 = vpow2.f32 %v343_v2 }
  0xda   : > { %v266_v19 = vsel %vm204_vm0, %v264_v17, 0.0 }
  0xe3   : > { %v496_v32 = vpop.eup %495 }
  0xef   : > { %s573_s26 = spop %469 }
  0xf0   : > { %v290_v34 = vstv %s573_s26  ;;  %s462_s27 = sadd.s32 4294967295, %s573_s26  ;;  %s225_s28 = scvt.s32.f32 %s573_s26 }
  0xf1   : > { %v296_v36 = vstv %s462_s27  ;;  %vm291_vm4 = vcmp.lt.s32.totalorder %v571_v33, %v290_v34 }
  0xf2   : > { %vm297_vm5 = vcmp.lt.s32.totalorder %v571_v33, %v296_v36  ;;  %vm292_vm6 = vmand %vm289_vm3, %vm291_vm4  ;;  %s464_s29 = sadd.f32 -1.0, %s225_s28 }
  0xf3   : > { %v461_v38 = vsel %vm292_vm6, 1.0, %v513_v37  ;;  %v580_v40 = vsel %vm297_vm5, 1.0, %v513_v37 }
  0xf4   : > { %v300_v39 = vmul.f32 %v488_v35, %v461_v38  ;;  %v303_v41 = vmul.f32 %v488_v35, %v580_v40  ;;  %v347_v35 = vpop.permute.xlu1 %346  ;;  %s352_s4 = smax.f32 %s514_s30, %s464_s29 }
  0xf5   : > { %v349_v38 = vmul.f32 %v496_v32, %v347_v35  ;;  %v360_v51 = vstv %s352_s4 }
  0xf6   : > { %301 = vadd.xlane.f32.xlu0 %v300_v39 }
  0xf7   : > { %v350_v44 = vmul.f32 %v580_v40, %v349_v38 }
  0xf9   : > { %v356_v49 = vrot.slane %v350_v44, %v355_v46 }
  0xfa   : > { %304 = vadd.xlane.f32.xlu0 %v303_v41 }
 0x110   : > { %314 = vrot.lane.b32.xlu0 %v562_v10, %s512_s25 }
 0x12f   : > { %267 = vadd.xlane.f32.xlu0 %v266_v19 }
 0x183   : > { %v302_v28 = vpop.xlane.xlu0 %301 }
 0x184   : > { %v309_v29 = vmax.f32 %v302_v28, 1e-30 }
 0x186   : > { %497 = vlog2.f32 %v309_v29 }
 0x187   : > { %v305_v30 = vpop.xlane.xlu0 %304 }
 0x188   : > { %v306_v31 = vmax.f32 %v305_v30, 1e-30 }
 0x18a   : > { %499 = vlog2.f32 %v306_v31 }
 0x18b   : > { %v315_v36 = vpop.permute.xlu0 %314  ;;  %501 = vrcp.f32 %v360_v51 }
 0x18c   : > { %v317_v42 = vsub.f32 %v315_v36, %v562_v10 }
 0x190   : > { %v498_v34 = vpop.eup %497 }
 0x191   : > { %v311_v39 = vmul.f32 0.6931472, %v498_v34 }
 0x194   : > { %v500_v37 = vpop.eup %499 }
 0x195   : > { %v308_v41 = vmul.f32 0.6931472, %v500_v37  ;;  %v502_v52 = vpop.eup %501 }
 0x197   : > { %v312_v43 = vsub.f32 %v308_v41, %v311_v39 }
 0x199   : > { %v318_v45 = vadd.f32 %v317_v42, %v312_v43 }
 0x19b   : > { %v319_v47 = vmul.f32 %v318_v45, %v318_v45 }
 0x19d   : > { %v320_v48 = vmin.f32 %v319_v47, 16.0 }
 0x19f   : > { %v357_v50 = vmul.f32 %v356_v49, %v320_v48 }
 0x1a1   : > { %358 = vadd.xlane.f32.xlu1 %v357_v50 }
 0x1bc   : > { %v268_v54 = vpop.xlane.xlu0 %267 }
 0x1bd   : > { %v269_v55 = vrot.slane %v268_v54, 4 }
 0x1bf   : > { %v270_v1 = vadd.f32 %v269_v55, %v268_v54 }
 0x1c1   : > { %v271_v56 = vrot.slane %v270_v1, 2 }
 0x1c3   : > { %v272_v57 = vadd.f32 %v271_v56, %v270_v1 }
 0x1c5   : > { %v273_v58 = vrot.slane %v272_v57, 1 }
 0x1c7   : > { %v274_v59 = vadd.f32 %v273_v58, %v272_v57 }
 0x1c9   : > { %471 = vpush %v274_v59 }
 0x1fa   : > { %s472_s5 = spop %471 }
 0x1fb   : > { %v376_v5 = vstv %s472_s5 }
 0x22e   : > { %v359_v53 = vpop.xlane.xlu1 %358 }
 0x22f   : > { %v362_v10 = vmul.f32 %v502_v52, %v359_v53 }
 0x231   : > { %v364_v40 = vsel %vm363_vm11, %v362_v10, 0.0 }
 0x232   : > { %365 = vadd.xlane.f32.xlu1 %v364_v40 }
 0x2bf   : > { %v366_v60 = vpop.xlane.xlu1 %365 }
 0x2c0   : > { %v367_v61 = vrot.slane %v366_v60, 4 }
 0x2c2   : > { %v368_v62 = vadd.f32 %v367_v61, %v366_v60 }
 0x2c4   : > { %v369_v63 = vrot.slane %v368_v62, 2 }
 0x2c6   : > { %v370_v0 = vadd.f32 %v369_v63, %v368_v62 }
 0x2c8   : > { %v371_v3 = vrot.slane %v370_v0, 1 }
 0x2ca   : > { %v372_v4 = vadd.f32 %v371_v3, %v370_v0 }
 0x2cc   : > { %473 = vpush %v372_v4 }
 0x2fd   : > { %s474_s6 = spop %473 }
 0x2fe   : > { %s374_s7 = smul.f32 0.125, %s474_s6 }
 0x300   : > { %v377_v6 = vstv %s374_s7 }
 0x301   : > { %v378_v7 = vsel %vm375_vm12, %v376_v5, %v377_v6 }
 0x302   : > { %380 = vst.msk [vmem:[%s197_s10] sm:$0x1] %vm379_vm13, %v378_v7 }
 0x303 PF: > { %s13_s12 = sadd.s32 1, %s509_s12  }
 0x304   : > { %p10_p4 = scmp.ge.s32.totalorder %s13_s12, 4  }
 0x306   :  { %12 = sbr.rel (!%p10_p4) target bundleno = 1 (0x1), region = 68 }

</bundles_post_ra>
